<compile_context>
chip_gen: v7x
topology: tpu7x:2x2x1
jax: 0.10.0
libtpu: 0.0.40
codegen_flags: <defaults>
</compile_context>

<pallas_src>
import functools

import jax
import jax.numpy as jnp
from jax.experimental import pallas as pl
from jax.experimental.pallas import tpu as pltpu


def _res_gated_gnn_kernel(num_layers, bb, N, H, offs, shapes,
                          x_ref, adj_ref, mask_ref, w_ref, out_ref):
    """One grid step == one block of `bb` graphs (block-diagonal adjacency)."""
    BN = bb * N
    H2 = 2 * H

    def wload(name):
        r0 = offs[name]
        r, c = shapes[name]
        return w_ref[r0:r0 + r, 0:c]          # static, 8-sublane-aligned ref slice

    x = x_ref[0]        # (BN, F)
    adj = adj_ref[0]    # (BN, BN) block-diagonal over the bb graphs
    mask = mask_ref[0]  # (BN, H)  pre-broadcast to lane width

    # --- weights from the packed slab --------------------------------------
    w_emb, b_emb = wload("w_emb"), wload("b_emb")
    w_zr = wload("w_zr")                       # (2H, 2H) fused z/r gate weight
    w_h = wload("w_h")                         # (2H, H)  fused candidate weight
    w_ln, b_ln = wload("w_ln"), wload("b_ln")
    # hoist bias / row-vector broadcasts out of the unrolled layer loop
    b_zr = jnp.broadcast_to(wload("b_zr"), (BN, H2))
    b_h = jnp.broadcast_to(wload("b_h"), (BN, H))
    w_sa = jnp.broadcast_to(wload("w_sa"), (BN, H))
    b_sa = jnp.broadcast_to(wload("b_sa"), (BN, 1))

    # --- h = emb_encode(x) * mask  (one matmul for the whole batch block) ---
    h = (jnp.dot(x, w_emb, preferred_element_type=jnp.float32) + b_emb) * mask

    # --- residual gated-GNN layers ------------------------------------------
    for _ in range(num_layers):
        # message passing: block-diagonal adj keeps this a single MXU push
        a = jnp.dot(adj, h, preferred_element_type=jnp.float32)          # (BN, H)
        # fused z/r gates: [a|h] @ [[wz0,wr0],[wz1,wr1]]
        ah = jnp.concatenate([a, h], axis=-1)                            # (BN, 2H)
        zr = jax.nn.sigmoid(
            jnp.dot(ah, w_zr, preferred_element_type=jnp.float32) + b_zr)
        z = zr[:, :H]
        r = zr[:, H:]
        # fused candidate: [a | r*h] @ [wh0; wh1]
        arh = jnp.concatenate([a, r * h], axis=-1)                       # (BN, 2H)
        hh = jnp.maximum(
            jnp.dot(arh, w_h, preferred_element_type=jnp.float32) + b_h, 0.0)
        # gnn = hh*z + h*(1-z);  residual:  h <- h + gnn*mask
        h = h + (h + (hh - h) * z) * mask

    # --- attention head + output transform ----------------------------------
    # soft_att on VPU (multiply) + XLU (lane reduce): no 1-lane MXU matmul
    soft_att = jax.nn.sigmoid(jnp.sum(h * w_sa, axis=-1, keepdims=True) + b_sa)
    y = jnp.maximum(jnp.dot(h, w_ln, preferred_element_type=jnp.float32) + b_ln, 0.0)
    y = soft_att * y * mask                                              # (BN, H)

    # att_op == 'mul': per-graph (sum over nodes) * (max over nodes)
    rows = []
    for g in range(bb):                     # static, sublane-aligned slices
        yg = y[g * N:(g + 1) * N, :]
        rows.append(jnp.sum(yg, axis=0, keepdims=True) *
                    jnp.max(yg, axis=0, keepdims=True))
    out_ref[0] = jnp.concatenate(rows, axis=0)                           # (bb, H)


def _pack_weights(params):
    """Fuse gate weights and pack everything into one f32 slab.

    Returns (packed, row_offsets, segment_shapes); segment row starts are
    8-sublane aligned so in-kernel static slices stay tile-friendly.
    """
    f32 = lambda a: a.astype(jnp.float32)
    # fused gate weight: [a|h] @ w_zr -> [z_pre | r_pre]
    w_zr = jnp.concatenate(
        [jnp.concatenate([f32(params["wz0"]), f32(params["wr0"])], axis=1),
         jnp.concatenate([f32(params["wz1"]), f32(params["wr1"])], axis=1)], axis=0)
    b_zr = jnp.concatenate([f32(params["bz0"]) + f32(params["bz1"]),
                            f32(params["br0"]) + f32(params["br1"])], axis=1)
    # fused candidate weight: [a | r*h] @ w_h
    w_h = jnp.concatenate([f32(params["wh0"]), f32(params["wh1"])], axis=0)
    b_h = f32(params["bh0"]) + f32(params["bh1"])

    segs = [
        ("w_emb", f32(params["w_emb"])), ("b_emb", f32(params["b_emb"])),
        ("w_zr", w_zr), ("b_zr", b_zr),
        ("w_h", w_h), ("b_h", b_h),
        ("w_ln", f32(params["wln"])), ("b_ln", f32(params["bln"])),
        ("w_sa", f32(params["wsa"]).T),       # (1, H) row vector for VPU soft_att
        ("b_sa", f32(params["bsa"])),         # (1, 1)
    ]
    cols = max(a.shape[1] for _, a in segs)
    offs, shapes, chunks, row = {}, {}, [], 0
    for name, a in segs:
        offs[name] = row
        shapes[name] = a.shape
        r_pad = -(-a.shape[0] // 8) * 8       # 8-sublane-aligned segment start
        chunk = jnp.zeros((r_pad, cols), jnp.float32)
        chunk = chunk.at[:a.shape[0], :a.shape[1]].set(a)
        chunks.append(chunk)
        row += r_pad
    return jnp.concatenate(chunks, axis=0), offs, shapes


def res_gated_gnn(inputs, adj, mask, params, num_layers, graphs_per_block=None):
    """inputs: (B, N, F), adj: (B, N, N), mask: (B, N, 1) -> (B, H)."""
    B, N, F = inputs.shape
    H = params["w_emb"].shape[1]
    bb = B if graphs_per_block is None else graphs_per_block
    assert B % bb == 0, "graphs_per_block must divide batch size"
    G = B // bb
    BN = bb * N

    # flatten graphs of a block into one row axis; adjacency becomes block-diagonal
    x_blk = inputs.astype(jnp.float32).reshape(G, BN, F)
    adj4 = adj.astype(jnp.float32).reshape(G, bb, N, N)
    eye = jnp.eye(bb, dtype=jnp.float32)
    adj_blk = jnp.einsum("gbij,bc->gbicj", adj4, eye).reshape(G, BN, BN)
    # pre-broadcast mask to lane width H (avoids per-use lane broadcast in kernel)
    mask_blk = jnp.broadcast_to(mask.astype(jnp.float32), (B, N, H)).reshape(G, BN, H)

    packed, offs, shapes = _pack_weights(params)

    kernel = functools.partial(_res_gated_gnn_kernel,
                               num_layers, bb, N, H, offs, shapes)

    out = pl.pallas_call(
        kernel,
        out_shape=jax.ShapeDtypeStruct((G, bb, H), jnp.float32),
        grid_spec=pltpu.PrefetchScalarGridSpec(
            num_scalar_prefetch=0,
            grid=(G,),
            in_specs=[
                pl.BlockSpec((1, BN, F), lambda g: (g, 0, 0)),    # node features
                pl.BlockSpec((1, BN, BN), lambda g: (g, 0, 0)),   # block-diag adj
                pl.BlockSpec((1, BN, H), lambda g: (g, 0, 0)),    # broadcast mask
                pl.BlockSpec(packed.shape, lambda g: (0, 0)),     # packed weights
            ],
            out_specs=pl.BlockSpec((1, bb, H), lambda g: (g, 0, 0)),
        ),
        compiler_params=pltpu.CompilerParams(
            dimension_semantics=("parallel",)),
    )(x_blk, adj_blk, mask_blk, packed)
    return out.reshape(B, H)


def _init_params(key, feature_size, hidden_size):
    """Deterministic synthetic parameters. Linear weights stored as (in, out)."""
    ks = jax.random.split(key, 18)

    def w(k, i, o):
        return (jax.random.normal(k, (i, o), jnp.float32) / jnp.sqrt(i)).astype(jnp.float32)

    def b(k, o):
        return (0.01 * jax.random.normal(k, (1, o), jnp.float32)).astype(jnp.float32)

    H, F = hidden_size, feature_size
    return {
        "w_emb": w(ks[0], F, H), "b_emb": b(ks[1], H),
        "wz0": w(ks[2], H, H), "bz0": b(ks[3], H),
        "wz1": w(ks[4], H, H), "bz1": b(ks[5], H),
        "wr0": w(ks[6], H, H), "br0": b(ks[7], H),
        "wr1": w(ks[8], H, H), "br1": b(ks[9], H),
        "wh0": w(ks[10], H, H), "bh0": b(ks[11], H),
        "wh1": w(ks[12], H, H), "bh1": b(ks[13], H),
        "wsa": w(ks[14], H, 1), "bsa": b(ks[15], 1),
        "wln": w(ks[16], H, H), "bln": b(ks[17], H),
    }


def _reference(inputs, adj, mask, p, num_layers):
    """Pure-JAX reference mirroring the PyTorch forward (eval mode, att_op='mul')."""
    def lin(v, w, b):
        return v @ w + b
    x = lin(inputs, p["w_emb"], p["b_emb"]) * mask
    for _ in range(num_layers):
        a = jnp.einsum("bij,bjh->bih", adj, x)
        z = jax.nn.sigmoid(lin(a, p["wz0"], p["bz0"]) + lin(x, p["wz1"], p["bz1"]))
        r = jax.nn.sigmoid(lin(a, p["wr0"], p["br0"]) + lin(x, p["wr1"], p["br1"]))
        h = jax.nn.relu(lin(a, p["wh0"], p["bh0"]) + lin(r * x, p["wh1"], p["bh1"]))
        gnn = h * z + x * (1.0 - z)
        x = x + gnn * mask
    soft_att = jax.nn.sigmoid(lin(x, p["wsa"], p["bsa"]))
    y = jax.nn.relu(lin(x, p["wln"], p["bln"]))
    y = soft_att * y * mask
    return jnp.sum(y, axis=1) * jnp.max(y, axis=1)


if __name__ == "__main__":
    B, N, F, H = 2, 16, 8, 32
    NUM_LAYERS = 2

    key = jax.random.PRNGKey(0)
    k_in, k_adj, k_mask, k_par = jax.random.split(key, 4)

    inputs = jax.random.normal(k_in, (B, N, F), jnp.float32)
    # symmetric-ish random adjacency with self loops
    a = jax.random.uniform(k_adj, (B, N, N), jnp.float32)
    adj = ((a + jnp.swapaxes(a, 1, 2)) * 0.5 > 0.6).astype(jnp.float32)
    adj = adj + jnp.eye(N, dtype=jnp.float32)[None]
    # node mask: last few nodes are padding
    valid = (jnp.arange(N) < 12).astype(jnp.float32)
    mask = jnp.broadcast_to(valid[None, :, None], (B, N, 1)).astype(jnp.float32)

    params = _init_params(k_par, F, H)

    out = res_gated_gnn(inputs, adj, mask, params, NUM_LAYERS)
    out = jax.block_until_ready(out)

    ref = _reference(inputs, adj, mask, params, NUM_LAYERS)
    assert out.shape == (B, H)
    assert jnp.allclose(out, ref, atol=1e-4, rtol=1e-4), (
        f"max abs diff {jnp.max(jnp.abs(out - ref))}")

    print("KERNEL_OK")
</pallas_src>

<mosaic_0001>
module attributes {stable_mosaic.version = 11 : i64} {
  func.func @_res_gated_gnn_kernel(%arg0: i32, %arg1: memref<1x32x8xf32, #tpu.memory_space<vmem>>, %arg2: memref<1x32x32xf32, #tpu.memory_space<vmem>>, %arg3: memref<1x32x32xf32, #tpu.memory_space<vmem>>, %arg4: memref<216x64xf32, #tpu.memory_space<vmem>>, %arg5: memref<1x2x32xf32, #tpu.memory_space<vmem>>) attributes {dimension_semantics = [#tpu.dimension_semantics<parallel>], iteration_bounds = array<i64: 1>, scalar_prefetch = 0 : i64, scratch_operands = 0 : i64, tpu.core_type = #tpu.core_type<tc>, window_params = [{transform_indices = @transform_0, window_bounds = array<i64: 1, 32, 8>}, {transform_indices = @transform_1, window_bounds = array<i64: 1, 32, 32>}, {transform_indices = @transform_2, window_bounds = array<i64: 1, 32, 32>}, {pipeline_mode = #tpu.pipeline_mode<synchronous>, transform_indices = @transform_3, window_bounds = array<i64: 216, 64>}, {transform_indices = @transform_4, window_bounds = array<i64: 1, 2, 32>}]} {
    %c0 = arith.constant 0 : index
    %c0_0 = arith.constant 0 : index
    %c0_1 = arith.constant 0 : index
    %0 = vector.load %arg1[%c0, %c0_0, %c0_1] : memref<1x32x8xf32, #tpu.memory_space<vmem>>, vector<1x32x8xf32>
    %1 = vector.shape_cast %0 : vector<1x32x8xf32> to vector<32x8xf32>
    %c0_2 = arith.constant 0 : index
    %c0_3 = arith.constant 0 : index
    %c0_4 = arith.constant 0 : index
    %2 = vector.load %arg2[%c0_2, %c0_3, %c0_4] : memref<1x32x32xf32, #tpu.memory_space<vmem>>, vector<1x32x32xf32>
    %3 = vector.shape_cast %2 : vector<1x32x32xf32> to vector<32x32xf32>
    %c0_5 = arith.constant 0 : index
    %c0_6 = arith.constant 0 : index
    %c0_7 = arith.constant 0 : index
    %4 = vector.load %arg3[%c0_5, %c0_6, %c0_7] : memref<1x32x32xf32, #tpu.memory_space<vmem>>, vector<1x32x32xf32>
    %5 = vector.shape_cast %4 : vector<1x32x32xf32> to vector<32x32xf32>
    %c0_8 = arith.constant 0 : index
    %c0_9 = arith.constant 0 : index
    %6 = vector.load %arg4[%c0_8, %c0_9] : memref<216x64xf32, #tpu.memory_space<vmem>>, vector<8x32xf32>
    %c8 = arith.constant 8 : index
    %c0_10 = arith.constant 0 : index
    %7 = vector.load %arg4[%c8, %c0_10] : memref<216x64xf32, #tpu.memory_space<vmem>>, vector<1x32xf32>
    %c16 = arith.constant 16 : index
    %c0_11 = arith.constant 0 : index
    %8 = vector.load %arg4[%c16, %c0_11] : memref<216x64xf32, #tpu.memory_space<vmem>>, vector<64x64xf32>
    %c88 = arith.constant 88 : index
    %c0_12 = arith.constant 0 : index
    %9 = vector.load %arg4[%c88, %c0_12] : memref<216x64xf32, #tpu.memory_space<vmem>>, vector<64x32xf32>
    %c160 = arith.constant 160 : index
    %c0_13 = arith.constant 0 : index
    %10 = vector.load %arg4[%c160, %c0_13] : memref<216x64xf32, #tpu.memory_space<vmem>>, vector<32x32xf32>
    %c192 = arith.constant 192 : index
    %c0_14 = arith.constant 0 : index
    %11 = vector.load %arg4[%c192, %c0_14] : memref<216x64xf32, #tpu.memory_space<vmem>>, vector<1x32xf32>
    %c80 = arith.constant 80 : index
    %c0_15 = arith.constant 0 : index
    %12 = vector.load %arg4[%c80, %c0_15] : memref<216x64xf32, #tpu.memory_space<vmem>>, vector<1x64xf32>
    %13 = vector.shape_cast %12 : vector<1x64xf32> to vector<1x64xf32>
    %14 = vector.broadcast %13 : vector<1x64xf32> to vector<32x64xf32>
    %c152 = arith.constant 152 : index
    %c0_16 = arith.constant 0 : index
    %15 = vector.load %arg4[%c152, %c0_16] : memref<216x64xf32, #tpu.memory_space<vmem>>, vector<1x32xf32>
    %16 = vector.shape_cast %15 : vector<1x32xf32> to vector<1x32xf32>
    %17 = vector.broadcast %16 : vector<1x32xf32> to vector<32x32xf32>
    %c200 = arith.constant 200 : index
    %c0_17 = arith.constant 0 : index
    %18 = vector.load %arg4[%c200, %c0_17] : memref<216x64xf32, #tpu.memory_space<vmem>>, vector<1x32xf32>
    %19 = vector.shape_cast %18 : vector<1x32xf32> to vector<1x32xf32>
    %20 = vector.broadcast %19 : vector<1x32xf32> to vector<32x32xf32>
    %c208 = arith.constant 208 : index
    %c0_18 = arith.constant 0 : index
    %21 = vector.load %arg4[%c208, %c0_18] : memref<216x64xf32, #tpu.memory_space<vmem>>, vector<1x1xf32>
    %22 = vector.shape_cast %21 : vector<1x1xf32> to vector<1x1xf32>
    %23 = vector.broadcast %22 : vector<1x1xf32> to vector<32x1xf32>
    %cst = arith.constant dense<0.000000e+00> : vector<32x32xf32>
    %24 = tpu.matmul %1, %6, %cst {dimension_numbers = #tpu.dot_dimension_numbers<[1], [0], [0], [1], [0, 0, 1, 1], [], []>} : vector<32x8xf32>, vector<8x32xf32>, vector<32x32xf32> -> vector<32x32xf32>
    %25 = vector.broadcast %7 : vector<1x32xf32> to vector<32x32xf32>
    %26 = arith.addf %24, %25 : vector<32x32xf32>
    %27 = arith.mulf %26, %5 : vector<32x32xf32>
    %cst_19 = arith.constant dense<0.000000e+00> : vector<32x32xf32>
    %28 = tpu.matmul %3, %27, %cst_19 {dimension_numbers = #tpu.dot_dimension_numbers<[1], [0], [0], [1], [0, 0, 1, 1], [], []>} : vector<32x32xf32>, vector<32x32xf32>, vector<32x32xf32> -> vector<32x32xf32>
    %29 = tpu.concatenate %28, %27 in 1 : vector<32x32xf32>, vector<32x32xf32> -> vector<32x64xf32>
    %cst_20 = arith.constant dense<0.000000e+00> : vector<32x64xf32>
    %30 = tpu.matmul %29, %8, %cst_20 {dimension_numbers = #tpu.dot_dimension_numbers<[1], [0], [0], [1], [0, 0, 1, 1], [], []>} : vector<32x64xf32>, vector<64x64xf32>, vector<32x64xf32> -> vector<32x64xf32>
    %31 = arith.addf %30, %14 : vector<32x64xf32>
    %32 = arith.negf %31 : vector<32x64xf32>
    %33 = math.exp %32 : vector<32x64xf32>
    %cst_21 = arith.constant 1.000000e+00 : f32
    %34 = vector.broadcast %cst_21 : f32 to vector<32x64xf32>
    %35 = arith.addf %34, %33 : vector<32x64xf32>
    %36 = arith.divf %34, %35 : vector<32x64xf32>
    %37 = vector.extract_strided_slice %36 {offsets = [0, 0], sizes = [32, 32], strides = [1, 1]} : vector<32x64xf32> to vector<32x32xf32>
    %38 = vector.extract_strided_slice %36 {offsets = [0, 32], sizes = [32, 32], strides = [1, 1]} : vector<32x64xf32> to vector<32x32xf32>
    %39 = arith.mulf %38, %27 : vector<32x32xf32>
    %40 = tpu.concatenate %28, %39 in 1 : vector<32x32xf32>, vector<32x32xf32> -> vector<32x64xf32>
    %cst_22 = arith.constant dense<0.000000e+00> : vector<32x32xf32>
    %41 = tpu.matmul %40, %9, %cst_22 {dimension_numbers = #tpu.dot_dimension_numbers<[1], [0], [0], [1], [0, 0, 1, 1], [], []>} : vector<32x64xf32>, vector<64x32xf32>, vector<32x32xf32> -> vector<32x32xf32>
    %42 = arith.addf %41, %17 : vector<32x32xf32>
    %cst_23 = arith.constant 0.000000e+00 : f32
    %43 = vector.broadcast %cst_23 : f32 to vector<32x32xf32>
    %44 = arith.maximumf %42, %43 : vector<32x32xf32>
    %45 = arith.subf %44, %27 : vector<32x32xf32>
    %46 = arith.mulf %45, %37 : vector<32x32xf32>
    %47 = arith.addf %27, %46 : vector<32x32xf32>
    %48 = arith.mulf %47, %5 : vector<32x32xf32>
    %49 = arith.addf %27, %48 : vector<32x32xf32>
    %cst_24 = arith.constant dense<0.000000e+00> : vector<32x32xf32>
    %50 = tpu.matmul %3, %49, %cst_24 {dimension_numbers = #tpu.dot_dimension_numbers<[1], [0], [0], [1], [0, 0, 1, 1], [], []>} : vector<32x32xf32>, vector<32x32xf32>, vector<32x32xf32> -> vector<32x32xf32>
    %51 = tpu.concatenate %50, %49 in 1 : vector<32x32xf32>, vector<32x32xf32> -> vector<32x64xf32>
    %cst_25 = arith.constant dense<0.000000e+00> : vector<32x64xf32>
    %52 = tpu.matmul %51, %8, %cst_25 {dimension_numbers = #tpu.dot_dimension_numbers<[1], [0], [0], [1], [0, 0, 1, 1], [], []>} : vector<32x64xf32>, vector<64x64xf32>, vector<32x64xf32> -> vector<32x64xf32>
    %53 = arith.addf %52, %14 : vector<32x64xf32>
    %54 = arith.negf %53 : vector<32x64xf32>
    %55 = math.exp %54 : vector<32x64xf32>
    %cst_26 = arith.constant 1.000000e+00 : f32
    %56 = vector.broadcast %cst_26 : f32 to vector<32x64xf32>
    %57 = arith.addf %56, %55 : vector<32x64xf32>
    %58 = arith.divf %56, %57 : vector<32x64xf32>
    %59 = vector.extract_strided_slice %58 {offsets = [0, 0], sizes = [32, 32], strides = [1, 1]} : vector<32x64xf32> to vector<32x32xf32>
    %60 = vector.extract_strided_slice %58 {offsets = [0, 32], sizes = [32, 32], strides = [1, 1]} : vector<32x64xf32> to vector<32x32xf32>
    %61 = arith.mulf %60, %49 : vector<32x32xf32>
    %62 = tpu.concatenate %50, %61 in 1 : vector<32x32xf32>, vector<32x32xf32> -> vector<32x64xf32>
    %cst_27 = arith.constant dense<0.000000e+00> : vector<32x32xf32>
    %63 = tpu.matmul %62, %9, %cst_27 {dimension_numbers = #tpu.dot_dimension_numbers<[1], [0], [0], [1], [0, 0, 1, 1], [], []>} : vector<32x64xf32>, vector<64x32xf32>, vector<32x32xf32> -> vector<32x32xf32>
    %64 = arith.addf %63, %17 : vector<32x32xf32>
    %cst_28 = arith.constant 0.000000e+00 : f32
    %65 = vector.broadcast %cst_28 : f32 to vector<32x32xf32>
    %66 = arith.maximumf %64, %65 : vector<32x32xf32>
    %67 = arith.subf %66, %49 : vector<32x32xf32>
    %68 = arith.mulf %67, %59 : vector<32x32xf32>
    %69 = arith.addf %49, %68 : vector<32x32xf32>
    %70 = arith.mulf %69, %5 : vector<32x32xf32>
    %71 = arith.addf %49, %70 : vector<32x32xf32>
    %72 = arith.mulf %71, %20 : vector<32x32xf32>
    %cst_29 = arith.constant dense<0.000000e+00> : vector<32xf32>
    %73 = vector.multi_reduction <add>, %72, %cst_29 [1] : vector<32x32xf32> to vector<32xf32>
    %74 = vector.shape_cast %73 : vector<32xf32> to vector<32x1xf32>
    %75 = arith.addf %74, %23 : vector<32x1xf32>
    %76 = arith.negf %75 : vector<32x1xf32>
    %77 = math.exp %76 : vector<32x1xf32>
    %cst_30 = arith.constant 1.000000e+00 : f32
    %78 = vector.broadcast %cst_30 : f32 to vector<32x1xf32>
    %79 = arith.addf %78, %77 : vector<32x1xf32>
    %80 = arith.divf %78, %79 : vector<32x1xf32>
    %cst_31 = arith.constant dense<0.000000e+00> : vector<32x32xf32>
    %81 = tpu.matmul %71, %10, %cst_31 {dimension_numbers = #tpu.dot_dimension_numbers<[1], [0], [0], [1], [0, 0, 1, 1], [], []>} : vector<32x32xf32>, vector<32x32xf32>, vector<32x32xf32> -> vector<32x32xf32>
    %82 = vector.broadcast %11 : vector<1x32xf32> to vector<32x32xf32>
    %83 = arith.addf %81, %82 : vector<32x32xf32>
    %cst_32 = arith.constant 0.000000e+00 : f32
    %84 = vector.broadcast %cst_32 : f32 to vector<32x32xf32>
    %85 = arith.maximumf %83, %84 : vector<32x32xf32>
    %86 = vector.broadcast %80 : vector<32x1xf32> to vector<32x32xf32>
    %87 = arith.mulf %86, %85 : vector<32x32xf32>
    %88 = arith.mulf %87, %5 : vector<32x32xf32>
    %89 = vector.extract_strided_slice %88 {offsets = [0, 0], sizes = [16, 32], strides = [1, 1]} : vector<32x32xf32> to vector<16x32xf32>
    %cst_33 = arith.constant dense<0.000000e+00> : vector<32xf32>
    %90 = vector.multi_reduction <add>, %89, %cst_33 [0] : vector<16x32xf32> to vector<32xf32>
    %91 = vector.shape_cast %90 : vector<32xf32> to vector<1x32xf32>
    %cst_34 = arith.constant dense<0xFF800000> : vector<32xf32>
    %92 = vector.multi_reduction <maximumf>, %89, %cst_34 [0] : vector<16x32xf32> to vector<32xf32>
    %93 = vector.shape_cast %92 : vector<32xf32> to vector<1x32xf32>
    %94 = arith.mulf %91, %93 : vector<1x32xf32>
    %95 = vector.extract_strided_slice %88 {offsets = [16, 0], sizes = [16, 32], strides = [1, 1]} : vector<32x32xf32> to vector<16x32xf32>
    %cst_35 = arith.constant dense<0.000000e+00> : vector<32xf32>
    %96 = vector.multi_reduction <add>, %95, %cst_35 [0] : vector<16x32xf32> to vector<32xf32>
    %97 = vector.shape_cast %96 : vector<32xf32> to vector<1x32xf32>
    %cst_36 = arith.constant dense<0xFF800000> : vector<32xf32>
    %98 = vector.multi_reduction <maximumf>, %95, %cst_36 [0] : vector<16x32xf32> to vector<32xf32>
    %99 = vector.shape_cast %98 : vector<32xf32> to vector<1x32xf32>
    %100 = arith.mulf %97, %99 : vector<1x32xf32>
    %101 = tpu.concatenate %94, %100 in 0 : vector<1x32xf32>, vector<1x32xf32> -> vector<2x32xf32>
    %c0_37 = arith.constant 0 : index
    %c0_38 = arith.constant 0 : index
    %c0_39 = arith.constant 0 : index
    %102 = vector.load %arg5[%c0_37, %c0_38, %c0_39] : memref<1x2x32xf32, #tpu.memory_space<vmem>>, vector<1x2x32xf32>
    %103 = vector.shape_cast %102 : vector<1x2x32xf32> to vector<2x32xf32>
    %104 = vector.shape_cast %101 : vector<2x32xf32> to vector<1x2x32xf32>
    tpu.vector_store %arg5[%c0_37, %c0_38, %c0_39], %104 {strides = array<i32>} : memref<1x2x32xf32, #tpu.memory_space<vmem>>, vector<1x2x32xf32>,
    return
  }
  func.func @transform_0(%arg0: i32) -> (i32, i32, i32) {
    %c0_i32 = arith.constant 0 : i32
    %c0_i32_0 = arith.constant 0 : i32
    %c0_i32_1 = arith.constant 0 : i32
    return %arg0, %c0_i32, %c0_i32_0 : i32, i32, i32
  }
  func.func @transform_1(%arg0: i32) -> (i32, i32, i32) {
    %c0_i32 = arith.constant 0 : i32
    %c0_i32_0 = arith.constant 0 : i32
    %c0_i32_1 = arith.constant 0 : i32
    return %arg0, %c0_i32, %c0_i32_0 : i32, i32, i32
  }
  func.func @transform_2(%arg0: i32) -> (i32, i32, i32) {
    %c0_i32 = arith.constant 0 : i32
    %c0_i32_0 = arith.constant 0 : i32
    %c0_i32_1 = arith.constant 0 : i32
    return %arg0, %c0_i32, %c0_i32_0 : i32, i32, i32
  }
  func.func @transform_3(%arg0: i32) -> (i32, i32) {
    %c0_i32 = arith.constant 0 : i32
    %c0_i32_0 = arith.constant 0 : i32
    %c0_i32_1 = arith.constant 0 : i32
    return %c0_i32, %c0_i32_0 : i32, i32
  }
  func.func @transform_4(%arg0: i32) -> (i32, i32, i32) {
    %c0_i32 = arith.constant 0 : i32
    %c0_i32_0 = arith.constant 0 : i32
    %c0_i32_1 = arith.constant 0 : i32
    return %arg0, %c0_i32, %c0_i32_0 : i32, i32, i32
  }
}

</mosaic_0001>

<bundles_post_ra>
// kernel: tpu_custom_call.1
= control target key start
LH: loop header
LB: loop body
LE: loop exit
PB: predicated region body
PF: predicated region fallthrough
CT: control target
= control target key end

     0   :  { %vm77_vm0 = vcmask 64512   ;;  %s1987_s0 = inlined_call_operand.vmem [shape: f32[1,32,8], index: 0, kind: input, shape index: {}]   ;;  %s1988_s1 = inlined_call_operand.vmem [shape: f32[1,32,32], index: 1, kind: input, shape index: {}]   ;;  %s1989_s2 = inlined_call_operand.vmem [shape: f32[1,32,32], index: 2, kind: input, shape index: {}]   ;;  %s1990_s3 = inlined_call_operand.vmem [shape: f32[216,64], index: 3, kind: input, shape index: {}]   ;;  %s1991_s4 = inlined_call_operand.hbm [shape: f32[1,2,32], index: 4, kind: output, shape index: {}]  }
   0x1   :  { %v30_v0 = vld [vmem:[%s1990_s3] sm:$0xff]  ;;  %v19_v2 = vld [vmem:[%s1987_s0 + $0x8] sm:$0xff]  ;;  %v20_v3 = vld [vmem:[%s1987_s0 + $0x10] sm:$0xff] }
   0x2   :  { %v18_v1 = vld [vmem:[%s1987_s0] sm:$0xff]  ;;  %1263 = vmatprep.subr.mxu0 %v30_v0 }
   0x3   :  { %1265 = vmatprep.mubr.msk.f32.mxu0 %vm77_vm0, %v18_v1  ;;  %1264 = vmatpush3.msra.mxu0 %v30_v0 }
   0x4   :  { %9 = vsyncpa [#allocation3], 0  ;;  %1266 = vmatmul.mubr.msk.f32.vlgmr.msra.gmra.mrb[0].mxu0 %vm77_vm0, %v19_v2  ;;  %v21_v4 = vld [vmem:[%s1987_s0 + $0x18] sm:$0xff]  ;;  %v1616_v5 = vld [vmem:[%s1988_s1] sm:$0xff]  ;;  %vm179_vm1 = vcmask 261120   ;;  %s1570_s22 = smov 32  }
   0x5   :  { %1268 = vmatprep.mubr.msk.f32.mxu0 %vm77_vm0, %v20_v3  ;;  %1279 = vmatprep.mubr.msk.f32.mxu1 %vm179_vm1, %v1616_v5  ;;  %v1140_v6 = vld [vmem:[%s1990_s3 + $0x8] ss:$0 sm:$0xff]  ;;  %v32_v9 = vld [vmem:[%s1990_s3 + $0x10] sm:$0xff]  ;;  %v33_v10 = vld [vmem:[%s1990_s3 + $0x18] sm:$0xff]  ;;  %vm297_vm2 = vcmask 523264   ;;  %vm1118_vm3 = vcmask 1040384  }
   0x6   :  { %v1626_v7 = vld [vmem:[%s1989_s2 + $0x8] sm:$0xff]  ;;  %v34_v11 = vld [vmem:[%s1990_s3 + $0x20] sm:$0xff]  ;;  %v1642_v15 = vpack.c.bf16 %v33_v10, %v32_v9  ;;  %v36_v19 = vld [vmem:[%s1990_s3 + $0x30] sm:$0xff]  ;;  %vm1120_vm4 = vcmask 254976  }
   0x7   :  { %v1640_v13 = vld [vmem:[%s1989_s2] sm:$0xff]  ;;  %v35_v16 = vld [vmem:[%s1990_s3 + $0x28] sm:$0xff]  ;;  %v37_v20 = vld [vmem:[%s1990_s3 + $0x38] sm:$0xff] }
   0x8   :  { %1269 = vmatmul.mubr.msk.f32.gmra.mrb[2].mxu0 %vm77_vm0, %v21_v4  ;;  %v1647_v18 = vpack.c.bf16 %v35_v16, %v34_v11  ;;  %1410 = vmatprep.subr.bf16.mxu0 %v1642_v15  ;;  %v1665_v23 = vld [vmem:[%s1989_s2 + $0x18] sm:$0xff]  ;;  %v1671_v26 = vld [vmem:[%s1989_s2 + $0x10] sm:$0xff]  ;;  %v1674_v28 = vpack.c.bf16 %v37_v20, %v36_v19  ;;  %v1698_v34 = vld [vmem:[%s1988_s1 + $0x8] sm:$0xff] }
   0x9   :  { %1412 = vmatpush3.bf16.msra.mxu0 %v1642_v15  ;;  %v1705_v35 = vld [vmem:[%s1988_s1 + $0x10] sm:$0xff]  ;;  %v1714_v36 = vld [vmem:[%s1988_s1 + $0x18] sm:$0xff]  ;;  %v38_v37 = vld [vmem:[%s1990_s3 + $0x40] sm:$0xff] }
   0xa   :  { %1414 = vmatprep.subr.bf16.mxu0 %v1647_v18  ;;  %v39_v38 = vld [vmem:[%s1990_s3 + $0x48] sm:$0xff]  ;;  %v40_v52 = vld [vmem:[%s1990_s3 + $0x58] sm:$0xff]  ;;  %v41_v53 = vld [vmem:[%s1990_s3 + $0x60] sm:$0xff] }
   0xb   :  { %v1724_v39 = vpack.c.bf16 %v39_v38, %v38_v37  ;;  %v1768_v54 = vpack.c.bf16 %v41_v53, %v40_v52  ;;  %v42_v55 = vld [vmem:[%s1990_s3 + $0x68] sm:$0xff]  ;;  %v43_v56 = vld [vmem:[%s1990_s3 + $0x70] sm:$0xff]  ;;  %v44_v58 = vld [vmem:[%s1990_s3 + $0x78] sm:$0xff] }
   0xc   :  { %v1778_v57 = vpack.c.bf16 %v43_v56, %v42_v55  ;;  %v45_v59 = vld [vmem:[%s1990_s3 + $0x80] sm:$0xff]  ;;  %v46_v60 = vld [vmem:[%s1990_s3 + $0x88] sm:$0xff]  ;;  %v47_v62 = vld [vmem:[%s1990_s3 + $0x90] sm:$0xff] }
   0xd   :  { %1416 = vmatpush3.bf16.msra.mxu0 %v1647_v18  ;;  %v1791_v61 = vpack.c.bf16 %v45_v59, %v44_v58  ;;  %v1796_v63 = vpack.c.bf16 %v47_v62, %v46_v60  ;;  %v1806_v0 = vld [vmem:[%s1990_s3 + $0x50] ss:$0 sm:$0xff] }
   0xe   :  { %1418 = vmatprep.subr.bf16.mxu0 %v1674_v28 }
  0x11   :  { %1420 = vmatpush3.bf16.msra.mxu0 %v1674_v28 }
  0x12   :  { %1422 = vmatprep.subr.bf16.mxu0 %v1724_v39 }
  0x15   :  { %1424 = vmatpush3.bf16.msra.mxu0 %v1724_v39 }
  0xd7   :  { %v1267_v8 = vpop.f32.mrb[0].mxu0 }
  0xd8   :  { %v162_v12 = vadd.f32 %v1267_v8, %v1140_v6  ;;  %v156_v14 = vpop.f32.mrb[1].mxu0 }
  0xd9   :  { %v157_v17 = vadd.f32 %v1140_v6, %v156_v14 }
  0xda   :  { %v1656_v21 = vmul.f32 %v162_v12, %v1626_v7 }
  0xdb   :  { %v1660_v22 = vmul.f32 %v157_v17, %v1640_v13  ;;  %v1270_v24 = vpop.f32.mrb[2].mxu0 }
  0xdc   :  { %v172_v25 = vadd.f32 %v1270_v24, %v1140_v6  ;;  %v166_v27 = vpop.f32.mrb[3].mxu0 }
  0xdd   :  { %v167_v29 = vadd.f32 %v1140_v6, %v166_v27  ;;  %281 = vrot.lane.b32.xlu0 %v1660_v22, %s1570_s22  ;;  %v1401_v30 = vpack.c.bf16 %v1656_v21, %v1660_v22 }
  0xde   :  { %v1681_v31 = vmul.f32 %v172_v25, %v1665_v23 }
  0xdf   :  { %v1684_v32 = vmul.f32 %v167_v29, %v1671_v26  ;;  %1402 = vmatprep.subr.bf16.mxu1 %v1401_v30 }
  0xe0   :  { %1404 = vmatpush3.bf16.msra.mxu1 %v1401_v30 }
  0xe1   :  { %285 = vrot.lane.b32.xlu1 %v1684_v32, %s1570_s22  ;;  %283 = vrot.lane.b32.xlu0 %v1656_v21, %s1570_s22  ;;  %v1405_v33 = vpack.c.bf16 %v1681_v31, %v1684_v32 }
  0xe3   :  { %1406 = vmatprep.subr.bf16.mxu1 %v1405_v33 }
  0xe4   :  { %1408 = vmatpush3.bf16.msra.mxu1 %v1405_v33 }
  0xe5   :  { %287 = vrot.lane.b32.xlu1 %v1681_v31, %s1570_s22  ;;  %1426 = vmatprep.subr.bf16.mxu1 %v1768_v54 }
  0xe7   :  { %1280 = vmatmul.mubr.msk.f32.vlgmr.msra.gmra.mrb[0].mxu1 %vm179_vm1, %v1698_v34 }
  0xe8   :  { %1282 = vmatprep.mubr.msk.f32.mxu1 %vm179_vm1, %v1705_v35  ;;  %1428 = vmatpush3.bf16.msra.mxu1 %v1768_v54 }
  0xe9   :  { %1430 = vmatprep.subr.bf16.mxu1 %v1778_v57 }
  0xeb   :  { %1283 = vmatmul.mubr.msk.f32.gmra.mrb[2].mxu1 %vm179_vm1, %v1714_v36 }
  0xec   :  { %1432 = vmatpush3.bf16.msra.mxu1 %v1778_v57 }
  0xed   :  { %1434 = vmatprep.subr.bf16.mxu1 %v1791_v61 }
  0xf0   :  { %1436 = vmatpush3.bf16.msra.mxu1 %v1791_v61 }
  0xf1   :  { %1438 = vmatprep.subr.bf16.mxu1 %v1796_v63 }
  0xf4   :  { %1440 = vmatpush3.bf16.msra.mxu1 %v1796_v63 }
  0xf5   :  { %1450 = vmatprep.subr.bf16.mxu1 %v1642_v15 }
 0x14f   :  { %v1728_v40 = vpop.permute.xlu0 %281 }
 0x153   :  { %v1730_v41 = vpop.permute.xlu1 %285  ;;  %v1736_v44 = vpop.permute.xlu0 %283 }
 0x157   :  { %v1750_v49 = vpop.permute.xlu1 %287 }
 0x1ba   :  { %v1732_v42 = vpop.f32.mrb[0].mxu1 }
 0x1bb   :  { %v1734_v43 = vpop.f32.mrb[1].mxu1  ;;  %v294_v46 = vsel %vm179_vm1, %v1732_v42, %v1736_v44 }
 0x1bc   :  { %v293_v45 = vsel %vm179_vm1, %v1734_v43, %v1728_v40 }
 0x1bd   :  { %1301 = vmatprep.mubr.msk.f32.mxu0 %vm297_vm2, %v293_v45 }
 0x1be   :  { %v1745_v47 = vpop.f32.mrb[2].mxu1  ;;  %1302 = vmatmul.mubr.msk.f32.vlgmr.msra.gmra.mrb[4].mxu0 %vm297_vm2, %v294_v46 }
 0x1bf   :  { %v1748_v48 = vpop.f32.mrb[3].mxu1  ;;  %v296_v51 = vsel %vm179_vm1, %v1745_v47, %v1750_v49 }
 0x1c0   :  { %v295_v50 = vsel %vm179_vm1, %v1748_v48, %v1730_v41 }
 0x1c1   :  { %1304 = vmatprep.mubr.msk.f32.mxu0 %vm297_vm2, %v295_v50 }
 0x1c2   :  { %1305 = vmatmul.mubr.msk.f32.gmra.mrb[6].mxu0 %vm297_vm2, %v296_v51 }
 0x1c3   :  { %1337 = vmatprep.mubr.msk.f32.mxu0 %vm179_vm1, %v1616_v5 }
 0x291   :  { %v1303_v1 = vpop.f32.mrb[4].mxu0 }
 0x292   :  { %v382_v2 = vadd.f32 %v1303_v1, %v1806_v0  ;;  %v376_v3 = vpop.f32.mrb[5].mxu0 }
 0x293   :  { %v377_v4 = vadd.f32 %v1806_v0, %v376_v3 }
 0x294   :  { %v1154_v5 = vmul.f32 -1.442695, %v382_v2 }
 0x295   :  { %v1153_v6 = vmul.f32 -1.442695, %v377_v4  ;;  %v1306_v8 = vpop.f32.mrb[6].mxu0 }
 0x296   :  { %1498 = vpow2.f32 %v1154_v5  ;;  %v392_v9 = vadd.f32 %v1306_v8, %v1806_v0  ;;  %v386_v10 = vpop.f32.mrb[7].mxu0 }
 0x297   :  { %1500 = vpow2.f32 %v1153_v6  ;;  %v387_v11 = vadd.f32 %v1806_v0, %v386_v10 }
 0x298   :  { %v1156_v12 = vmul.f32 -1.442695, %v392_v9 }
 0x299   :  { %v1155_v14 = vmul.f32 -1.442695, %v387_v11 }
 0x29a   :  { %1502 = vpow2.f32 %v1156_v12 }
 0x29b   :  { %1504 = vpow2.f32 %v1155_v14 }
 0x2a0   :  { %v1499_v16 = vpop.eup %1498 }
 0x2a1   :  { %v1501_v17 = vpop.eup %1500  ;;  %v408_v19 = vadd.f32 1.0, %v1499_v16 }
 0x2a2   :  { %v407_v20 = vadd.f32 1.0, %v1501_v17 }
 0x2a3   :  { %1506 = vrcp.f32 %v408_v19 }
 0x2a4   :  { %v1503_v24 = vpop.eup %1502  ;;  %1508 = vrcp.f32 %v407_v20 }
 0x2a5   :  { %v1505_v25 = vpop.eup %1504  ;;  %v410_v27 = vadd.f32 1.0, %v1503_v24 }
 0x2a6   :  { %v409_v29 = vadd.f32 1.0, %v1505_v25 }
 0x2a7   :  { %1510 = vrcp.f32 %v410_v27 }
 0x2a8   :  { %1512 = vrcp.f32 %v409_v29 }
 0x2ad   :  { %v1507_v30 = vpop.eup %1506 }
 0x2ae   :  { %v1509_v33 = vpop.eup %1508  ;;  %v420_v37 = vmul.f32 %v1507_v30, %v1736_v44 }
 0x2af   :  { %v419_v38 = vmul.f32 %v1509_v33, %v1728_v40 }
 0x2b0   :  { %v424_v51 = vsel %vm179_vm1, %v1732_v42, %v420_v37 }
 0x2b1   :  { %v1511_v45 = vpop.eup %1510  ;;  %v423_v46 = vsel %vm179_vm1, %v1734_v43, %v419_v38 }
 0x2b2   :  { %v1513_v50 = vpop.eup %1512  ;;  %1323 = vmatprep.mubr.msk.f32.mxu1 %vm297_vm2, %v423_v46  ;;  %v422_v52 = vmul.f32 %v1511_v45, %v1750_v49 }
 0x2b3   :  { %1324 = vmatmul.mubr.msk.f32.vlgmr.msra.gmra.mrb[4].mxu1 %vm297_vm2, %v424_v51  ;;  %v421_v53 = vmul.f32 %v1513_v50, %v1730_v41 }
 0x2b4   :  { %1452 = vmatpush3.bf16.msra.mxu1 %v1642_v15  ;;  %v426_v43 = vsel %vm179_vm1, %v1745_v47, %v422_v52  ;;  %v1838_v15 = vld [vmem:[%s1990_s3 + $0x98] ss:$0 sm:$0xff] }
 0x2b5   :  { %v425_v40 = vsel %vm179_vm1, %v1748_v48, %v421_v53  ;;  %1454 = vmatprep.subr.bf16.mxu1 %v1647_v18 }
 0x2b6   :  { %1326 = vmatprep.mubr.msk.f32.mxu1 %vm297_vm2, %v425_v40 }
 0x2b7   :  { %1327 = vmatmul.mubr.msk.f32.gmra.mrb[6].mxu1 %vm297_vm2, %v426_v43 }
 0x2b8   :  { %1456 = vmatpush3.bf16.msra.mxu1 %v1647_v18 }
 0x2b9   :  { %1458 = vmatprep.subr.bf16.mxu1 %v1674_v28 }
 0x2bc   :  { %1460 = vmatpush3.bf16.msra.mxu1 %v1674_v28 }
 0x2bd   :  { %1462 = vmatprep.subr.bf16.mxu1 %v1724_v39 }
 0x2c0   :  { %1464 = vmatpush3.bf16.msra.mxu1 %v1724_v39 }
 0x386   :  { %v1325_v41 = vpop.f32.mrb[4].mxu1 }
 0x387   :  { %v511_v42 = vadd.f32 %v1325_v41, %v1838_v15  ;;  %v505_v44 = vpop.f32.mrb[5].mxu1 }
 0x388   :  { %v506_v47 = vadd.f32 %v1838_v15, %v505_v44 }
 0x389   :  { %v525_v18 = vmax.f32 %v511_v42, 0.0 }
 0x38a   :  { %v524_v48 = vmax.f32 %v506_v47, 0.0  ;;  %v1328_v49 = vpop.f32.mrb[6].mxu1 }
 0x38b   :  { %v529_v28 = vsub.f32 %v525_v18, %v1656_v21  ;;  %v521_v55 = vadd.f32 %v1328_v49, %v1838_v15  ;;  %v515_v56 = vpop.f32.mrb[7].mxu1 }
 0x38c   :  { %v528_v39 = vsub.f32 %v524_v48, %v1660_v22  ;;  %v516_v58 = vadd.f32 %v1838_v15, %v515_v56 }
 0x38d   :  { %v533_v59 = vmul.f32 %v1507_v30, %v529_v28  ;;  %v527_v60 = vmax.f32 %v521_v55, 0.0 }
 0x38e   :  { %v532_v62 = vmul.f32 %v1509_v33, %v528_v39  ;;  %v526_v1 = vmax.f32 %v516_v58, 0.0 }
 0x38f   :  { %v537_v2 = vadd.f32 %v533_v59, %v1656_v21  ;;  %v531_v3 = vsub.f32 %v527_v60, %v1681_v31 }
 0x390   :  { %v536_v4 = vadd.f32 %v532_v62, %v1660_v22  ;;  %v530_v5 = vsub.f32 %v526_v1, %v1684_v32 }
 0x391   :  { %v541_v6 = vmul.f32 %v537_v2, %v1626_v7  ;;  %v535_v8 = vmul.f32 %v1511_v45, %v531_v3 }
 0x392   :  { %v540_v9 = vmul.f32 %v536_v4, %v1640_v13  ;;  %v534_v10 = vmul.f32 %v1513_v50, %v530_v5  ;;  %v48_v5 = vld [vmem:[%s1990_s3 + $0xa0] sm:$0xff] }
 0x393   :  { %v1853_v11 = vadd.f32 %v541_v6, %v1656_v21  ;;  %v539_v12 = vadd.f32 %v535_v8, %v1681_v31  ;;  %v49_v6 = vld [vmem:[%s1990_s3 + $0xa8] sm:$0xff] }
 0x394   :  { %v1857_v14 = vadd.f32 %v540_v9, %v1660_v22  ;;  %v538_v16 = vadd.f32 %v534_v10, %v1684_v32  ;;  %v1481_v8 = vpack.c.bf16 %v49_v6, %v48_v5  ;;  %v50_v9 = vld [vmem:[%s1990_s3 + $0xb0] sm:$0xff]  ;;  %v51_v10 = vld [vmem:[%s1990_s3 + $0xb8] sm:$0xff] }
 0x395   :  { %v543_v17 = vmul.f32 %v539_v12, %v1665_v23  ;;  %639 = vrot.lane.b32.xlu1 %v1853_v11, %s1570_s22  ;;  %v1485_v12 = vpack.c.bf16 %v51_v10, %v50_v9 }
 0x396   :  { %v542_v19 = vmul.f32 %v538_v16, %v1671_v26  ;;  %637 = vrot.lane.b32.xlu0 %v1857_v14, %s1570_s22  ;;  %v1441_v21 = vpack.c.bf16 %v1853_v11, %v1857_v14  ;;  %1489 = vmatprep.subr.bf16.mxu1 %v1481_v8 }
 0x397   :  { %v1869_v20 = vadd.f32 %v543_v17, %v1681_v31 }
 0x398   :  { %v1872_v22 = vadd.f32 %v542_v19, %v1684_v32  ;;  %1442 = vmatprep.subr.bf16.mxu0 %v1441_v21 }
 0x399   :  { %1444 = vmatpush3.bf16.msra.mxu0 %v1441_v21  ;;  %643 = vrot.lane.b32.xlu1 %v1869_v20, %s1570_s22 }
 0x39a   :  { %641 = vrot.lane.b32.xlu0 %v1872_v22, %s1570_s22  ;;  %v1445_v24 = vpack.c.bf16 %v1869_v20, %v1872_v22 }
 0x39c   :  { %1446 = vmatprep.subr.bf16.mxu0 %v1445_v24 }
 0x39d   :  { %1448 = vmatpush3.bf16.msra.mxu0 %v1445_v24 }
 0x39e   :  { %1466 = vmatprep.subr.bf16.mxu0 %v1768_v54 }
 0x3a0   :  { %1338 = vmatmul.mubr.msk.f32.vlgmr.msra.gmra.mrb[8].mxu0 %vm179_vm1, %v1698_v34 }
 0x3a1   :  { %1340 = vmatprep.mubr.msk.f32.mxu0 %vm179_vm1, %v1705_v35  ;;  %1468 = vmatpush3.bf16.msra.mxu0 %v1768_v54 }
 0x3a2   :  { %1470 = vmatprep.subr.bf16.mxu0 %v1778_v57 }
 0x3a4   :  { %1341 = vmatmul.mubr.msk.f32.gmra.mrb[10].mxu0 %vm179_vm1, %v1714_v36 }
 0x3a5   :  { %1472 = vmatpush3.bf16.msra.mxu0 %v1778_v57 }
 0x3a6   :  { %1474 = vmatprep.subr.bf16.mxu0 %v1791_v61 }
 0x3a9   :  { %1476 = vmatpush3.bf16.msra.mxu0 %v1791_v61 }
 0x3aa   :  { %1478 = vmatprep.subr.bf16.mxu0 %v1796_v63 }
 0x3ad   :  { %1480 = vmatpush3.bf16.msra.mxu0 %v1796_v63 }
 0x3ae   :  { %1482 = vmatprep.subr.bf16.mxu0 %v1481_v8 }
 0x407   :  { %v640_v32 = vpop.permute.xlu1 %639 }
 0x408   :  { %v638_v31 = vpop.permute.xlu0 %637 }
 0x40b   :  { %v644_v61 = vpop.permute.xlu1 %643 }
 0x40c   :  { %v642_v57 = vpop.permute.xlu0 %641 }
 0x473   :  { %v1339_v34 = vpop.f32.mrb[8].mxu0 }
 0x474   :  { %v614_v35 = vpop.f32.mrb[9].mxu0  ;;  %v650_v25 = vsel %vm179_vm1, %v1339_v34, %v640_v32 }
 0x475   :  { %v649_v54 = vsel %vm179_vm1, %v614_v35, %v638_v31 }
 0x476   :  { %1359 = vmatprep.mubr.msk.f32.mxu1 %vm297_vm2, %v649_v54 }
 0x477   :  { %v1342_v36 = vpop.f32.mrb[10].mxu0  ;;  %1360 = vmatmul.mubr.msk.f32.vlgmr.msra.gmra.mrb[8].mxu1 %vm297_vm2, %v650_v25 }
 0x478   :  { %v624_v27 = vpop.f32.mrb[11].mxu0  ;;  %v652_v63 = vsel %vm179_vm1, %v1342_v36, %v644_v61  ;;  %1491 = vmatpush3.bf16.msra.mxu1 %v1481_v8 }
 0x479   :  { %v651_v29 = vsel %vm179_vm1, %v624_v27, %v642_v57  ;;  %1490 = vmatprep.subr.bf16.mxu1 %v1485_v12 }
 0x47a   :  { %1362 = vmatprep.mubr.msk.f32.mxu1 %vm297_vm2, %v651_v29 }
 0x47b   :  { %1363 = vmatmul.mubr.msk.f32.gmra.mrb[10].mxu1 %vm297_vm2, %v652_v63 }
 0x47c   :  { %1492 = vmatpush3.bf16.msra.mxu1 %v1485_v12 }
 0x54a   :  { %v1361_v30 = vpop.f32.mrb[8].mxu1 }
 0x54b   :  { %v737_v33 = vadd.f32 %v1361_v30, %v1806_v0  ;;  %v731_v37 = vpop.f32.mrb[9].mxu1 }
 0x54c   :  { %v732_v38 = vadd.f32 %v1806_v0, %v731_v37 }
 0x54d   :  { %v1170_v45 = vmul.f32 -1.442695, %v737_v33 }
 0x54e   :  { %v1169_v46 = vmul.f32 -1.442695, %v732_v38  ;;  %v1364_v50 = vpop.f32.mrb[10].mxu1 }
 0x54f   :  { %1514 = vpow2.f32 %v1170_v45  ;;  %v747_v51 = vadd.f32 %v1364_v50, %v1806_v0  ;;  %v741_v52 = vpop.f32.mrb[11].mxu1 }
 0x550   :  { %1516 = vpow2.f32 %v1169_v46  ;;  %v742_v53 = vadd.f32 %v1806_v0, %v741_v52 }
 0x551   :  { %v1172_v40 = vmul.f32 -1.442695, %v747_v51 }
 0x552   :  { %v1171_v43 = vmul.f32 -1.442695, %v742_v53 }
 0x553   :  { %1518 = vpow2.f32 %v1172_v40 }
 0x554   :  { %1520 = vpow2.f32 %v1171_v43 }
 0x559   :  { %v1515_v41 = vpop.eup %1514 }
 0x55a   :  { %v1517_v42 = vpop.eup %1516  ;;  %v763_v44 = vadd.f32 1.0, %v1515_v41 }
 0x55b   :  { %v762_v47 = vadd.f32 1.0, %v1517_v42 }
 0x55c   :  { %1522 = vrcp.f32 %v763_v44 }
 0x55d   :  { %v1519_v18 = vpop.eup %1518  ;;  %1524 = vrcp.f32 %v762_v47 }
 0x55e   :  { %v1521_v48 = vpop.eup %1520  ;;  %v765_v49 = vadd.f32 1.0, %v1519_v18 }
 0x55f   :  { %v764_v28 = vadd.f32 1.0, %v1521_v48 }
 0x560   :  { %1526 = vrcp.f32 %v765_v49 }
 0x561   :  { %1528 = vrcp.f32 %v764_v28 }
 0x566   :  { %v1523_v55 = vpop.eup %1522 }
 0x567   :  { %v1525_v56 = vpop.eup %1524  ;;  %v775_v39 = vmul.f32 %v1523_v55, %v640_v32 }
 0x568   :  { %v774_v0 = vmul.f32 %v1525_v56, %v638_v31 }
 0x569   :  { %v779_v62 = vsel %vm179_vm1, %v1339_v34, %v775_v39 }
 0x56a   :  { %v1527_v58 = vpop.eup %1526  ;;  %v778_v59 = vsel %vm179_vm1, %v614_v35, %v774_v0 }
 0x56b   :  { %v1529_v60 = vpop.eup %1528  ;;  %1381 = vmatprep.mubr.msk.f32.mxu0 %vm297_vm2, %v778_v59  ;;  %v777_v1 = vmul.f32 %v1527_v58, %v644_v61 }
 0x56c   :  { %1382 = vmatmul.mubr.msk.f32.vlgmr.msra.gmra.mrb[12].mxu0 %vm297_vm2, %v779_v62  ;;  %v776_v2 = vmul.f32 %v1529_v60, %v642_v57 }
 0x56d   :  { %v781_v4 = vsel %vm179_vm1, %v1342_v36, %v777_v1  ;;  %1484 = vmatpush3.bf16.msra.mxu0 %v1481_v8 }
 0x56e   :  { %v780_v3 = vsel %vm179_vm1, %v624_v27, %v776_v2  ;;  %1486 = vmatprep.subr.bf16.mxu0 %v1485_v12 }
 0x56f   :  { %1384 = vmatprep.mubr.msk.f32.mxu0 %vm297_vm2, %v780_v3 }
 0x570   :  { %1385 = vmatmul.mubr.msk.f32.gmra.mrb[14].mxu0 %vm297_vm2, %v781_v4 }
 0x571   :  { %1488 = vmatpush3.bf16.msra.mxu0 %v1485_v12 }
 0x63f   :  { %v1383_v16 = vpop.f32.mrb[12].mxu0 }
 0x640   :  { %v866_v17 = vadd.f32 %v1383_v16, %v1838_v15  ;;  %v860_v19 = vpop.f32.mrb[13].mxu0 }
 0x641   :  { %v861_v21 = vadd.f32 %v1838_v15, %v860_v19 }
 0x642   :  { %v880_v24 = vmax.f32 %v866_v17, 0.0 }
 0x643   :  { %v879_v31 = vmax.f32 %v861_v21, 0.0  ;;  %v1386_v32 = vpop.f32.mrb[14].mxu0 }
 0x644   :  { %v884_v34 = vsub.f32 %v880_v24, %v1853_v11  ;;  %v876_v35 = vadd.f32 %v1386_v32, %v1838_v15  ;;  %v870_v54 = vpop.f32.mrb[15].mxu0 }
 0x645   :  { %v883_v25 = vsub.f32 %v879_v31, %v1857_v14  ;;  %v871_v36 = vadd.f32 %v1838_v15, %v870_v54  ;;  %v1138_v15 = vld [vmem:[%s1990_s3 + $0xc8] ss:$0 sm:$0xff] }
 0x646   :  { %v888_v57 = vmul.f32 %v1523_v55, %v884_v34  ;;  %v882_v27 = vmax.f32 %v876_v35, 0.0 }
 0x647   :  { %v887_v61 = vmul.f32 %v1525_v56, %v883_v25  ;;  %v881_v29 = vmax.f32 %v871_v36, 0.0  ;;  %v1571_v56 = vmov 0   ;;  %v1181_v36 = vld [vmem:[%s1990_s3 + $0xc0] ss:$0 sm:$0xff] }
 0x648   :  { %v892_v63 = vadd.f32 %v888_v57, %v1853_v11  ;;  %v886_v30 = vsub.f32 %v882_v27, %v1869_v20  ;;  %1497 = vset.pattern.permute.xlu0 %v1571_v56  ;;  %1496 = vset.pattern.permute.xlu1 %v1571_v56 }
 0x649   :  { %v891_v33 = vadd.f32 %v887_v61, %v1857_v14  ;;  %v885_v37 = vsub.f32 %v881_v29, %v1872_v22 }
 0x64a   :  { %v896_v38 = vmul.f32 %v892_v63, %v1626_v7  ;;  %v890_v45 = vmul.f32 %v1527_v58, %v886_v30 }
 0x64b   :  { %v895_v46 = vmul.f32 %v891_v33, %v1640_v13  ;;  %v889_v50 = vmul.f32 %v1529_v60, %v885_v37 }
 0x64c   :  { %v900_v51 = vadd.f32 %v896_v38, %v1853_v11  ;;  %v894_v52 = vadd.f32 %v890_v45, %v1869_v20 }
 0x64d   :  { %v893_v53 = vadd.f32 %v889_v50, %v1872_v22  ;;  %v899_v40 = vadd.f32 %v895_v46, %v1857_v14 }
 0x64e   :  { %v898_v43 = vmul.f32 %v894_v52, %v1665_v23  ;;  %v904_v41 = vmul.f32 %v1138_v15, %v900_v51 }
 0x64f   :  { %v897_v42 = vmul.f32 %v893_v53, %v1671_v26  ;;  %1395 = vmatprep.mubr.msk.f32.mxu0 %vm179_vm1, %v899_v40  ;;  %v903_v44 = vmul.f32 %v1138_v15, %v899_v40 }
 0x650   :  { %1396 = vmatmul.mubr.msk.f32.vlgmr.msra.gmra.mrb[16].mxu0 %vm179_vm1, %v900_v51  ;;  %v910_v47 = vsel %vm179_vm1, %v904_v41, 0.0  ;;  %v902_v11 = vadd.f32 %v898_v43, %v1869_v20  ;;  %v1139_v20 = vld [vmem:[%s1990_s3 + $0xd0] ss:$0 sm:$0xff]  ;;  %s1572_s3 = smov [#allocation2]  }
 0x651   :  { %911 = vadd.xlane.f32.xlu1 %v910_v47  ;;  %v907_v18 = vsel %vm179_vm1, %v903_v44, 0.0  ;;  %v901_v48 = vadd.f32 %v897_v42, %v1872_v22  ;;  %s1128_s9 = sshll.u32 %s1572_s3, 4  ;;  %s1129_s9 = int_to_ptr.vmem [resolvable:$true] %s1128_s9 }
 0x652   :  { %908 = vadd.xlane.f32.xlu0 %v907_v18  ;;  %v906_v28 = vmul.f32 %v1138_v15, %v902_v11  ;;  %s1546_s10 = scalar_lea.vmem %s1129_s9, 32  ;;  %p1551_p1 = scmp.lt.s32.totalorder %s1129_s9, %s1129_s9 }
 0x653   :  { %1398 = vmatprep.mubr.msk.f32.mxu1 %vm179_vm1, %v901_v48  ;;  %v905_v14 = vmul.f32 %v1138_v15, %v901_v48  ;;  %p1547_p0 = scmp.ne.s32.totalorder %s1129_s9, %s1546_s10  ;;  %p1552_p2 = scmp.lt.s32.totalorder %s1546_s10, %s1546_s10 }
 0x654   :  { %1399 = vmatmul.mubr.msk.f32.vlgmr.msra.gmra.mrb[12].mxu1 %vm179_vm1, %v902_v11  ;;  %v916_v55 = vsel %vm179_vm1, %v906_v28, 0.0 }
 0x655   :  { %v913_v49 = vsel %vm179_vm1, %v905_v14, 0.0  ;;  %p1553_p3 = por %p1552_p2, %p1551_p1 }
 0x656   :  { %914 = vadd.xlane.f32.xlu0 %v913_v49 }
 0x657   :  { %p1554_p4 = pnand %p1553_p3, %p1547_p0 }
 0x65a   :  { %917 = vadd.xlane.f32.xlu0 %v916_v55 }
 0x6de   :  { %v912_v22 = vpop.xlane.xlu1 %911 }
 0x6df   :  { %v920_v39 = vadd.f32 %v1139_v20, %v912_v22  ;;  %v909_v0 = vpop.xlane.xlu0 %908 }
 0x6e0   :  { %v919_v58 = vadd.f32 %v1139_v20, %v909_v0 }
 0x6e1   :  { %v1178_v59 = vmul.f32 -1.442695, %v920_v39 }
 0x6e2   :  { %v1177_v60 = vmul.f32 -1.442695, %v919_v58 }
 0x6e3   :  { %1530 = vpow2.f32 %v1178_v59  ;;  %v915_v62 = vpop.xlane.xlu0 %914 }
 0x6e4   :  { %1532 = vpow2.f32 %v1177_v60  ;;  %v921_v1 = vadd.f32 %v1139_v20, %v915_v62 }
 0x6e6   :  { %v1179_v2 = vmul.f32 -1.442695, %v921_v1 }
 0x6e7   :  { %v918_v3 = vpop.xlane.xlu0 %917 }
 0x6e8   :  { %1534 = vpow2.f32 %v1179_v2  ;;  %v922_v4 = vadd.f32 %v1139_v20, %v918_v3 }
 0x6ea   :  { %v1180_v5 = vmul.f32 -1.442695, %v922_v4 }
 0x6ec   :  { %1536 = vpow2.f32 %v1180_v5 }
 0x6ed   :  { %v1531_v6 = vpop.eup %1530 }
 0x6ee   :  { %v1533_v8 = vpop.eup %1532  ;;  %v936_v9 = vadd.f32 1.0, %v1531_v6 }
 0x6ef   :  { %v935_v10 = vadd.f32 1.0, %v1533_v8 }
 0x6f0   :  { %1538 = vrcp.f32 %v936_v9 }
 0x6f1   :  { %1540 = vrcp.f32 %v935_v10 }
 0x6f2   :  { %v1535_v12 = vpop.eup %1534 }
 0x6f3   :  { %v937_v16 = vadd.f32 1.0, %v1535_v12 }
 0x6f5   :  { %1542 = vrcp.f32 %v937_v16 }
 0x6f6   :  { %v1537_v17 = vpop.eup %1536 }
 0x6f7   :  { %v938_v19 = vadd.f32 1.0, %v1537_v17 }
 0x6f9   :  { %1544 = vrcp.f32 %v938_v19 }
 0x6fa   :  { %v1539_v21 = vpop.eup %1538 }
 0x6fb   :  { %v1541_v24 = vpop.eup %1540  ;;  %1059 = vperm.xlu0 %1497, %v1539_v21  }
 0x6fc   :  { %1054 = vperm.xlu1 %1496, %v1541_v24  }
 0x6ff   :  { %v1543_v31 = vpop.eup %1542 }
 0x700   :  { %1064 = vperm.xlu1 %1496, %v1543_v31  }
 0x703   :  { %v1545_v32 = vpop.eup %1544 }
 0x704   :  { %1069 = vperm.xlu1 %1496, %v1545_v32  }
 0x723   :  { %v1397_v34 = vpop.f32.mrb[16].mxu0 }
 0x724   :  { %v1029_v35 = vpop.f32.mrb[17].mxu0  ;;  %v1035_v57 = vadd.f32 %v1397_v34, %v1181_v36 }
 0x725   :  { %v1030_v27 = vadd.f32 %v1181_v36, %v1029_v35 }
 0x726   :  { %v1049_v61 = vmax.f32 %v1035_v57, 0.0 }
 0x727   :  { %v1400_v54 = vpop.f32.mrb[12].mxu1  ;;  %v1048_v29 = vmax.f32 %v1030_v27, 0.0 }
 0x728   :  { %v1039_v25 = vpop.f32.mrb[13].mxu1  ;;  %v1045_v46 = vadd.f32 %v1400_v54, %v1181_v36 }
 0x729   :  { %v1040_v63 = vadd.f32 %v1181_v36, %v1039_v25 }
 0x72a   :  { %v1051_v47 = vmax.f32 %v1045_v46, 0.0 }
 0x72b   :  { %v1050_v50 = vmax.f32 %v1040_v63, 0.0 }
 0x77a   :  { %v1060_v30 = vpop.permute.xlu0 %1059 }
 0x77b   :  { %v1073_v33 = vmul.f32 %v1060_v30, %v1049_v61  ;;  %v1055_v37 = vpop.permute.xlu1 %1054 }
 0x77c   :  { %v1072_v38 = vmul.f32 %v1055_v37, %v1048_v29 }
 0x77d   :  { %v1077_v45 = vmul.f32 %v1073_v33, %v1626_v7 }
 0x77e   :  { %v1076_v15 = vmul.f32 %v1072_v38, %v1640_v13 }
 0x77f   :  { %v1081_v51 = vsel %vm179_vm1, %v1077_v45, 0.0  ;;  %v1090_v52 = vsel %vm179_vm1, %v1077_v45, -inf  ;;  %v1065_v53 = vpop.permute.xlu1 %1064 }
 0x780   :  { %v1080_v40 = vsel %vm179_vm1, %v1076_v15, 0.0  ;;  %v1089_v43 = vsel %vm179_vm1, %v1076_v15, -inf  ;;  %v1074_v41 = vmul.f32 %v1065_v53, %v1050_v50 }
 0x781   :  { %v1082_v42 = vadd.f32 %v1081_v51, %v1080_v40  ;;  %v1091_v44 = vmax.f32 %v1089_v43, %v1090_v52 }
 0x782   :  { %v1078_v48 = vmul.f32 %v1074_v41, %v1671_v26 }
 0x783   :  { %v1083_v11 = vrot.slane %v1082_v42, 4  ;;  %v1092_v18 = vrot.slane %v1091_v44, 4  ;;  %v1070_v7 = vpop.permute.xlu1 %1069 }
 0x784   :  { %v1075_v14 = vmul.f32 %v1070_v7, %v1051_v47  ;;  %v1099_v20 = vsel %vm179_vm1, %v1078_v48, 0.0  ;;  %v1108_v22 = vsel %vm179_vm1, %v1078_v48, -inf }
 0x785   :  { %v1084_v13 = vadd.f32 %v1083_v11, %v1082_v42  ;;  %v1093_v49 = vmax.f32 %v1091_v44, %v1092_v18 }
 0x786   :  { %v1079_v28 = vmul.f32 %v1075_v14, %v1665_v23 }
 0x787   :  { %v1085_v55 = vrot.slane %v1084_v13, 2  ;;  %v1094_v56 = vrot.slane %v1093_v49, 2 }
 0x788   :  { %v1100_v39 = vsel %vm179_vm1, %v1079_v28, 0.0  ;;  %v1109_v0 = vsel %vm179_vm1, %v1079_v28, -inf }
 0x789   :  { %v1086_v58 = vadd.f32 %v1085_v55, %v1084_v13  ;;  %v1095_v59 = vmax.f32 %v1093_v49, %v1094_v56  ;;  %v1101_v60 = vadd.f32 %v1100_v39, %v1099_v20  ;;  %v1110_v62 = vmax.f32 %v1108_v22, %v1109_v0 }
 0x78b   :  { %v1102_v26 = vrot.slane %v1101_v60, 4  ;;  %v1111_v1 = vrot.slane %v1110_v62, 4  ;;  %v1087_v2 = vrot.slane %v1086_v58, 1  ;;  %v1096_v3 = vrot.slane %v1095_v59, 1 }
 0x78d   :  { %v1103_v4 = vadd.f32 %v1102_v26, %v1101_v60  ;;  %v1112_v23 = vmax.f32 %v1110_v62, %v1111_v1  ;;  %v1088_v5 = vadd.f32 %v1087_v2, %v1086_v58  ;;  %v1097_v6 = vmax.f32 %v1095_v59, %v1096_v3 }
 0x78f   :  { %v1104_v8 = vrot.slane %v1103_v4, 2  ;;  %v1113_v9 = vrot.slane %v1112_v23, 2  ;;  %v1098_v10 = vmul.f32 %v1097_v6, %v1088_v5 }
 0x791   :  { %v1105_v12 = vadd.f32 %v1104_v8, %v1103_v4  ;;  %v1114_v16 = vmax.f32 %v1112_v23, %v1113_v9 }
 0x793   :  { %v1106_v17 = vrot.slane %v1105_v12, 1  ;;  %v1115_v19 = vrot.slane %v1114_v16, 1 }
 0x795   :  { %v1107_v21 = vadd.f32 %v1106_v17, %v1105_v12  ;;  %v1116_v24 = vmax.f32 %v1114_v16, %v1115_v19 }
 0x797   :  { %v1117_v31 = vmul.f32 %v1116_v24, %v1107_v21 }
 0x799   :  { %v1119_v32 = vsel %vm1118_vm3, %v1098_v10, %v1117_v31 }
 0x79a   :  { %1121 = vst.msk [vmem:[#allocation2] sm:$0x3] %vm1120_vm4, %v1119_v32 }
 0x79b   :  { %1557 = shalt.err (!%p1554_p4)
}
 0x79c   :  { %s1558_s13 = scalar_lea.hbm %s1991_s4, 32 }
 0x79d   :  { %p1559_p5 = scmp.ne.s32.totalorder %s1991_s4, %s1558_s13  ;;  %p1562_p6 = scmp.lt.u32.totalorder %s1558_s13, %s1991_s4 }
 0x79f   :  { %p1564_p7 = pnand %p1562_p6, %p1559_p5 }
 0x7a1   :  { %1567 = shalt.err (!%p1564_p7)
}
 0x7a2   :  { %1131 = dma.vmem_to_hbm [thread:$0]  %s1129_s9, 32, %s1991_s4, [#allocation3]  }
 0x7a3   :  { %1568 = dma.done.wait [#allocation3], 32  }
 0x7a4   :  { %1569 = vsyncadd [#allocation3], 4294967264 }
 0x7a5   :  { %1135 = vsyncpa [#allocation3], 1 }

</bundles_post_ra>
